<compile_context>
chip_gen: v6e
topology: v6e:2x2x1
jax: 0.10.0
libtpu: 0.0.40
codegen_flags: <defaults>
</compile_context>

<pallas_src>
import jax
import jax.numpy as jnp
from jax.experimental import pallas as pl
from jax.experimental.pallas import tpu as pltpu

LANE = 128  # lane-pad small channel/class dims to full vreg lane width


# -----------------------------------------------------------------------------
# Single fused kernel: im2col matmul (conv) + bias + ReLU + global avg pool
#                      + FC head + counter update
# -----------------------------------------------------------------------------
def _fused_forward_kernel(cols_ref, wc_ref, bc_ref, wf_ref, bf_ref,
                          cnt_ref, inc_ref, out_ref, cnt_out_ref):
    """Gridless single step; all refs are whole arrays resident in VMEM.

    cols_ref   : (B, H*W, 9*Cin) bf16  im2col patches (lane-dense K=9*Cin)
    wc_ref     : (9*Cin, 128)    bf16  conv weight, Cout lane-padded to 128
    bc_ref     : (1, 128)        f32   conv bias (lane-padded)
    wf_ref     : (128, 128)      bf16  FC weight (Cout x NC, lane-padded)
    bf_ref     : (1, 128)        f32   FC bias (lane-padded)
    cnt_ref    : (1, 128)        i32   forwarded_samples (lane = sample idx)
    inc_ref    : (1, 128)        i32   per-sample increment (mask or ones)
    out_ref    : (B, 128)        f32   logits (lane-padded)
    cnt_out_ref: (1, 128)        i32   updated counter (aliases cnt_ref's HBM)
    """
    B, HW, K = cols_ref.shape
    Coutp = wc_ref.shape[-1]

    # Conv as a single K=9*Cin MXU matmul (bf16 operands, f32 accumulation).
    h = jnp.dot(cols_ref[...].reshape(B * HW, K), wc_ref[...],
                preferred_element_type=jnp.float32)             # (B*HW, 128)
    h = jnp.maximum(h + bc_ref[...], 0.0)                       # bias + ReLU (f32)

    # Global average pooling: tile-aligned relabel + sublane reduction (XLU);
    # the MXU is idle here so this is off the matmul critical path.
    pooled = jnp.sum(h.reshape(B, HW, Coutp), axis=1) * (1.0 / HW)   # (B,128)

    # FC head (lane-padded NC -> unmasked lane-dense store).
    out_ref[...] = (jnp.dot(pooled.astype(wf_ref.dtype), wf_ref[...],
                            preferred_element_type=jnp.float32) + bf_ref[...])

    # Fused SampleWiseCounter.update(mask): forwarded_samples += inc.
    cnt_out_ref[...] = cnt_ref[...] + inc_ref[...]


# -----------------------------------------------------------------------------
# One-time parameter preparation (hoisted out of the per-call forward path)
# -----------------------------------------------------------------------------
def prepare_params(wconv, bconv, wfc, bfc):
    """Lane-pad / pack weights once; returns arrays consumed by every forward."""
    KH, KW, Cin, Cout = wconv.shape
    NC = wfc.shape[-1]
    assert KH == 3 and KW == 3
    assert Cout <= LANE and NC <= LANE
    wc = (jnp.zeros((KH * KW * Cin, LANE), jnp.float32)
          .at[:, :Cout].set(wconv.reshape(KH * KW * Cin, Cout).astype(jnp.float32))
          .astype(jnp.bfloat16))
    bc = jnp.zeros((1, LANE), jnp.float32).at[0, :Cout].set(bconv)
    wf = (jnp.zeros((LANE, LANE), jnp.float32)
          .at[:Cout, :NC].set(wfc.astype(jnp.float32))
          .astype(jnp.bfloat16))
    bf = jnp.zeros((1, LANE), jnp.float32).at[0, :NC].set(bfc)
    return (wc, bc, wf, bf, NC)


def counter_reset(batch_size):
    """SampleWiseCounter.reset(inputs): zero per-sample counter (lane layout)."""
    # TODO(synk): PyTorch uses int64 counters; TPU Pallas uses int32 here.
    assert batch_size <= LANE, "counter lane packing assumes batch <= 128"
    return jnp.zeros((1, LANE), jnp.int32)


def counter_read(cnt2d, batch_size):
    return cnt2d[0, :batch_size]


# -----------------------------------------------------------------------------
# Forward core (jitted): im2col + one fused pallas_call
# -----------------------------------------------------------------------------
def _im2col_bf16(x_nchw):
    B, Cin, H, W = x_nchw.shape
    x = jnp.transpose(x_nchw, (0, 2, 3, 1)).astype(jnp.float32)       # NHWC
    xpad = jnp.pad(x, ((0, 0), (1, 1), (1, 1), (0, 0)))               # SAME pad
    taps = [xpad[:, dy:dy + H, dx:dx + W, :]                          # (B,H,W,Cin)
            for dy in range(3) for dx in range(3)]
    cols = jnp.concatenate(taps, axis=-1)                             # (B,H,W,9*Cin)
    return cols.reshape(B, H * W, 9 * Cin).astype(jnp.bfloat16)


@jax.jit
def _forward_core(cnt2d, x_nchw, inc2d, wc, bc, wf, bf):
    B = x_nchw.shape[0]
    cols = _im2col_bf16(x_nchw)

    vmem = pl.BlockSpec(memory_space=pltpu.MemorySpace.VMEM)
    # Gridless: whole problem fits in VMEM at this size.  For large B/H/W,
    # switch to grid=(B_tiles,) with dimension_semantics=("parallel",) and
    # per-batch BlockSpecs so both v7x TensorCores are used and tiles fit
    # its 64 MiB VMEM.
    logits_pad, cnt_out = pl.pallas_call(
        _fused_forward_kernel,
        out_shape=(jax.ShapeDtypeStruct((B, LANE), jnp.float32),
                   jax.ShapeDtypeStruct((1, LANE), jnp.int32)),
        in_specs=[vmem] * 7,
        out_specs=(vmem, vmem),
        input_output_aliases={5: 1},   # cnt2d (input 5) -> cnt_out (output 1)
    )(cols, wc, bc, wf, bf, cnt2d, inc2d)
    return logits_pad, cnt_out


def wrapped_forward(cnt2d, x_nchw, padded_params, mask=None):
    """ModelWrapper.forward equivalent (functional counter state).

    cnt2d: (1, 128) int32 resident counter. Returns (logits, new_cnt2d).
    """
    wc, bc, wf, bf, nc = padded_params
    B = x_nchw.shape[0]
    assert B <= LANE, "counter lane packing assumes batch <= 128"
    if mask is None:
        inc2d = jnp.ones((1, LANE), jnp.int32)
    else:
        inc2d = jnp.zeros((1, LANE), jnp.int32).at[0, :B].set(mask.astype(jnp.int32))
    logits_pad, cnt_out = _forward_core(cnt2d, x_nchw, inc2d, wc, bc, wf, bf)
    # TODO(synk): forwarded/backwarded_batches hooks are host-side Python ints
    # in PyTorch; no kernel work needed, so they are not modeled here.
    return logits_pad[:, :nc], cnt_out


# ----------------------------- pure-JAX reference ----------------------------
def _ref_forward(x_nchw, wconv, bconv, wfc, bfc):
    x = jnp.transpose(x_nchw, (0, 2, 3, 1))
    y = jax.lax.conv_general_dilated(
        x, wconv, window_strides=(1, 1), padding="SAME",
        dimension_numbers=("NHWC", "HWIO", "NHWC")) + bconv
    y = jnp.maximum(y, 0.0)
    pooled = jnp.mean(y, axis=(1, 2))
    return pooled @ wfc + bfc


if __name__ == "__main__":
    key = jax.random.PRNGKey(0)
    k1, k2, k3, k4, k5 = jax.random.split(key, 5)

    B, Cin, H, W = 2, 4, 16, 16
    Cout, NC = 8, 10

    x = jax.random.normal(k1, (B, Cin, H, W), jnp.float32)
    wconv = 0.1 * jax.random.normal(k2, (3, 3, Cin, Cout), jnp.float32)
    bconv = 0.1 * jax.random.normal(k3, (Cout,), jnp.float32)
    wfc = 0.1 * jax.random.normal(k4, (Cout, NC), jnp.float32)
    bfc = 0.1 * jax.random.normal(k5, (NC,), jnp.float32)

    padded_params = prepare_params(wconv, bconv, wfc, bfc)   # once, not per call
    cnt2d = counter_reset(B)                                 # counter.reset(inputs)

    # forward with mask=None (all samples counted)
    logits, cnt2d = wrapped_forward(cnt2d, x, padded_params, mask=None)
    # forward with a mask (only masked samples counted)
    mask = jnp.array([True, False])
    logits2, cnt2d = wrapped_forward(cnt2d, x, padded_params, mask=mask)

    logits = jax.block_until_ready(logits)
    logits2 = jax.block_until_ready(logits2)
    counts = jax.block_until_ready(counter_read(cnt2d, B))

    ref = _ref_forward(x, wconv, bconv, wfc, bfc)
    # bf16 MXU operands with f32 accumulation -> slightly looser tolerance.
    assert jnp.allclose(logits, ref, rtol=2e-2, atol=2e-2), "logits mismatch"
    assert jnp.allclose(logits2, ref, rtol=2e-2, atol=2e-2), "logits mismatch"
    assert counts.tolist() == [2, 1], f"counter mismatch: {counts.tolist()}"

    print("KERNEL_OK")
</pallas_src>

<mosaic_0001>
module attributes {stable_mosaic.version = 11 : i64} {
  func.func @_fused_forward_kernel(%arg0: memref<2x256x36xbf16, #tpu.memory_space<vmem>>, %arg1: memref<36x128xbf16, #tpu.memory_space<vmem>>, %arg2: memref<1x128xf32, #tpu.memory_space<vmem>>, %arg3: memref<128x128xbf16, #tpu.memory_space<vmem>>, %arg4: memref<1x128xf32, #tpu.memory_space<vmem>>, %arg5: memref<1x128xi32, #tpu.memory_space<vmem>>, %arg6: memref<1x128xi32, #tpu.memory_space<vmem>>, %arg7: memref<2x128xf32, #tpu.memory_space<vmem>>, %arg8: memref<1x128xi32, #tpu.memory_space<vmem>>) attributes {dimension_semantics = [], scalar_prefetch = 0 : i64, scratch_operands = 0 : i64, tpu.core_type = #tpu.core_type<tc>} {
    %c0 = arith.constant 0 : index
    %c0_0 = arith.constant 0 : index
    %c0_1 = arith.constant 0 : index
    %0 = vector.load %arg0[%c0, %c0_0, %c0_1] : memref<2x256x36xbf16, #tpu.memory_space<vmem>>, vector<2x256x36xbf16>
    %1 = vector.shape_cast %0 : vector<2x256x36xbf16> to vector<512x36xbf16>
    %c0_2 = arith.constant 0 : index
    %c0_3 = arith.constant 0 : index
    %2 = vector.load %arg1[%c0_2, %c0_3] : memref<36x128xbf16, #tpu.memory_space<vmem>>, vector<36x128xbf16>
    %cst = arith.constant dense<0.000000e+00> : vector<512x128xf32>
    %3 = tpu.matmul %1, %2, %cst {dimension_numbers = #tpu.dot_dimension_numbers<[1], [0], [0], [1], [0, 0, 1, 1], [], []>} : vector<512x36xbf16>, vector<36x128xbf16>, vector<512x128xf32> -> vector<512x128xf32>
    %c0_4 = arith.constant 0 : index
    %c0_5 = arith.constant 0 : index
    %4 = vector.load %arg2[%c0_4, %c0_5] : memref<1x128xf32, #tpu.memory_space<vmem>>, vector<1x128xf32>
    %5 = vector.broadcast %4 : vector<1x128xf32> to vector<512x128xf32>
    %6 = arith.addf %3, %5 : vector<512x128xf32>
    %cst_6 = arith.constant 0.000000e+00 : f32
    %7 = vector.broadcast %cst_6 : f32 to vector<512x128xf32>
    %8 = arith.maximumf %6, %7 : vector<512x128xf32>
    %9 = vector.shape_cast %8 : vector<512x128xf32> to vector<2x256x128xf32>
    %cst_7 = arith.constant dense<0.000000e+00> : vector<2x128xf32>
    %10 = vector.multi_reduction <add>, %9, %cst_7 [1] : vector<2x256x128xf32> to vector<2x128xf32>
    %cst_8 = arith.constant 3.906250e-03 : f32
    %11 = vector.broadcast %cst_8 : f32 to vector<2x128xf32>
    %12 = arith.mulf %10, %11 : vector<2x128xf32>
    %13 = arith.truncf %12 : vector<2x128xf32> to vector<2x128xbf16>
    %c0_9 = arith.constant 0 : index
    %c0_10 = arith.constant 0 : index
    %14 = vector.load %arg3[%c0_9, %c0_10] : memref<128x128xbf16, #tpu.memory_space<vmem>>, vector<128x128xbf16>
    %cst_11 = arith.constant dense<0.000000e+00> : vector<2x128xf32>
    %15 = tpu.matmul %13, %14, %cst_11 {dimension_numbers = #tpu.dot_dimension_numbers<[1], [0], [0], [1], [0, 0, 1, 1], [], []>} : vector<2x128xbf16>, vector<128x128xbf16>, vector<2x128xf32> -> vector<2x128xf32>
    %c0_12 = arith.constant 0 : index
    %c0_13 = arith.constant 0 : index
    %16 = vector.load %arg4[%c0_12, %c0_13] : memref<1x128xf32, #tpu.memory_space<vmem>>, vector<1x128xf32>
    %17 = vector.broadcast %16 : vector<1x128xf32> to vector<2x128xf32>
    %18 = arith.addf %15, %17 : vector<2x128xf32>
    %c0_14 = arith.constant 0 : index
    %c0_15 = arith.constant 0 : index
    %19 = vector.load %arg7[%c0_14, %c0_15] : memref<2x128xf32, #tpu.memory_space<vmem>>, vector<2x128xf32>
    tpu.vector_store %arg7[%c0_14, %c0_15], %18 {strides = array<i32>} : memref<2x128xf32, #tpu.memory_space<vmem>>, vector<2x128xf32>,
    %c0_16 = arith.constant 0 : index
    %c0_17 = arith.constant 0 : index
    %20 = vector.load %arg5[%c0_16, %c0_17] : memref<1x128xi32, #tpu.memory_space<vmem>>, vector<1x128xi32>
    %c0_18 = arith.constant 0 : index
    %c0_19 = arith.constant 0 : index
    %21 = vector.load %arg6[%c0_18, %c0_19] : memref<1x128xi32, #tpu.memory_space<vmem>>, vector<1x128xi32>
    %22 = arith.addi %20, %21 : vector<1x128xi32>
    %c0_20 = arith.constant 0 : index
    %c0_21 = arith.constant 0 : index
    %23 = vector.load %arg8[%c0_20, %c0_21] : memref<1x128xi32, #tpu.memory_space<vmem>>, vector<1x128xi32>
    tpu.vector_store %arg8[%c0_20, %c0_21], %22 {strides = array<i32>} : memref<1x128xi32, #tpu.memory_space<vmem>>, vector<1x128xi32>,
    return
  }
}

</mosaic_0001>

<bundles_post_ra>
// kernel: _forward_core.1
= control target key start
LH: loop header
LB: loop body
LE: loop exit
PB: predicated region body
PF: predicated region fallthrough
CT: control target
= control target key end

     0   :  { %14 = vsyncpa [#allocation3], 0  ;;  %s1659_s0 = inlined_call_operand.vmem [shape: bf16[2,256,36], index: 0, kind: input, shape index: {}]   ;;  %s1660_s1 = inlined_call_operand.vmem [shape: bf16[36,128], index: 1, kind: input, shape index: {}]   ;;  %s1661_s2 = inlined_call_operand.vmem [shape: f32[1,128], index: 2, kind: input, shape index: {}]   ;;  %s1662_s3 = inlined_call_operand.vmem [shape: bf16[128,128], index: 3, kind: input, shape index: {}]   ;;  %s1663_s4 = inlined_call_operand.vmem [shape: f32[1,128], index: 4, kind: input, shape index: {}]   ;;  %s1664_s5 = inlined_call_operand.hbm [shape: s32[1,128], index: 5, kind: input, shape index: {}, may-alias: {5,8}]   ;;  %s1665_s6 = inlined_call_operand.vmem [shape: s32[1,128], index: 6, kind: input, shape index: {}]   ;;  %s1666_s7 = inlined_call_operand.hbm [shape: f32[2,128], index: 7, kind: output, shape index: {0}]   ;;  %s1667_s8 = inlined_call_operand.hbm [shape: s32[1,128], index: 8, kind: output, shape index: {1}, may-alias: {5,8}]  }
   0x1   :  { %15 = vsyncpa [#allocation4], 0 }
   0x2   :  { %16 = vsyncpa [#allocation7], 0  ;;  %s1312_s27 = smov [#allocation2]  }
   0x3   :  { %s33_s28 = sshll.u32 %s1312_s27, 4  ;;  %s34_s28 = int_to_ptr.vmem [resolvable:$true] %s33_s28 }
   0x4   :  { %s1254_s29 = scalar_lea.vmem %s34_s28, 16  ;;  %s1258_s30 = scalar_lea.vmem %s34_s28, 32 }
   0x5   :  { %p1255_p0 = scmp.ne.s32.totalorder %s34_s28, %s1254_s29  ;;  %p1259_p1 = scmp.lt.s32.totalorder %s34_s28, %s34_s28 }
   0x6   :  { %p1260_p2 = scmp.lt.s32.totalorder %s1258_s30, %s1254_s29 }
   0x8   :  { %p1261_p3 = por %p1260_p2, %p1259_p1 }
   0xa   :  { %p1262_p4 = pnand %p1261_p3, %p1255_p0 }
   0xc   :  { %1265 = shalt.err (!%p1262_p4)
}
   0xd   :  { %36 = dma.hbm_to_vmem [thread:$0]  %s1664_s5, 16, %s34_s28, [#allocation3]  }
   0xe   :  { %1306 = dma.done.wait [#allocation3], 16  }
   0xf   :  { %1307 = vsyncadd [#allocation3], 4294967280  ;;  %vm391_vm0 = vcmask 1041408   ;;  %v1203_v0 = vld [vmem:[%s1660_s1 + $0x10] ss:$0 sps:$4 sm:$0x33]  }
  0x10   :  { %v1204_v1 = vld [vmem:[%s1660_s1 + $0x8] sm:$0xff]   ;;  %1196 = vmatprep.subr.msk.bf16.mxu0 %vm391_vm0, %v1203_v0  ;;  %v393_v2 = vsel %vm391_vm0, %v1203_v0, 0  ;;  %vm294_vm1 = vcmask 293888   ;;  %1197 = vmatprep.subr.msk.bf16.mxu1 %vm391_vm0, %v1203_v0  ;;  %v1206_v3 = vld [vmem:[%s1659_s0] sm:$0xff]   ;;  %v1208_v6 = vld [vmem:[%s1659_s0 + $0x10] sm:$0xff]   ;;  %v1313_v37 = vmov 0.0  }
  0x11   :  { %1101 = vmatpush3.bf16.msra.mxu0 %v393_v2  ;;  %1193 = vmatpush3.bf16.msra.mxu1 %v393_v2  ;;  %v1205_v4 = vld [vmem:[%s1660_s1] sm:$0xff]   ;;  %v1207_v5 = vld [vmem:[%s1659_s0 + $0x8] sm:$0xff]   ;;  %v1209_v7 = vld [vmem:[%s1659_s0 + $0x18] sm:$0xff]   ;;  %vm1314_vm2 = vmmov 0   ;;  %vm853_vm3 = vcmask 1041409   ;;  %s1315_s24 = smov [#allocation6]  }
  0x12   :  { %1102 = vmatprep.subr.bf16.mxu0 %v1204_v1  ;;  %1191 = vmatprep.subr.bf16.mxu1 %v1204_v1  ;;  %v1210_v8 = vld [vmem:[%s1659_s0 + $0x20] sm:$0xff]   ;;  %v1224_v9 = vld [vmem:[%s1659_s0 + $0x90] sm:$0xff]   ;;  %v1225_v10 = vld [vmem:[%s1659_s0 + $0x98] sm:$0xff]   ;;  %s966_s25 = sshll.u32 %s1315_s24, 4  ;;  %s967_s25 = int_to_ptr.vmem [resolvable:$true] %s966_s25 }
  0x13   :  { %1106 = vmatprep.mubr.msk.bf16.mxu0 %vm294_vm1, %v1206_v3  ;;  %1142 = vmatprep.mubr.msk.bf16.mxu1 %vm294_vm1, %v1224_v9  ;;  %v1226_v11 = vld [vmem:[%s1659_s0 + $0xa0] sm:$0xff]   ;;  %v1211_v12 = vld [vmem:[%s1659_s0 + $0x28] sm:$0xff]   ;;  %v1212_v13 = vld [vmem:[%s1659_s0 + $0x30] sm:$0xff]   ;;  %s1266_s26 = scalar_lea.vmem %s967_s25, 16  ;;  %s1270_s27 = scalar_lea.vmem %s967_s25, 32 }
  0x14   :  { %v1227_v14 = vld [vmem:[%s1659_s0 + $0xa8] sm:$0xff]   ;;  %v1228_v15 = vld [vmem:[%s1659_s0 + $0xb0] sm:$0xff]   ;;  %v1213_v16 = vld [vmem:[%s1659_s0 + $0x38] sm:$0xff]   ;;  %p1267_p5 = scmp.ne.s32.totalorder %s967_s25, %s1266_s26  ;;  %p1271_p6 = scmp.lt.s32.totalorder %s967_s25, %s967_s25 }
  0x15   :  { %1103 = vmatpush3.bf16.msra.mxu0 %v1204_v1  ;;  %1194 = vmatpush3.bf16.msra.mxu1 %v1204_v1  ;;  %v1214_v17 = vld [vmem:[%s1659_s0 + $0x40] sm:$0xff]   ;;  %v1229_v18 = vld [vmem:[%s1659_s0 + $0xb8] sm:$0xff]   ;;  %v1215_v20 = vld [vmem:[%s1659_s0 + $0x48] sm:$0xff]   ;;  %p1272_p7 = scmp.lt.s32.totalorder %s1270_s27, %s1266_s26 }
  0x16   :  { %1104 = vmatprep.subr.bf16.mxu0 %v1205_v4  ;;  %1192 = vmatprep.subr.bf16.mxu1 %v1205_v4  ;;  %v1230_v19 = vld [vmem:[%s1659_s0 + $0xc0] sm:$0xff]   ;;  %v1216_v21 = vld [vmem:[%s1659_s0 + $0x50] sm:$0xff]   ;;  %v1231_v22 = vld [vmem:[%s1659_s0 + $0xc8] sm:$0xff]  }
  0x17   :  { %v1232_v23 = vld [vmem:[%s1659_s0 + $0xd0] sm:$0xff]   ;;  %v1217_v24 = vld [vmem:[%s1659_s0 + $0x58] sm:$0xff]   ;;  %v1218_v25 = vld [vmem:[%s1659_s0 + $0x60] sm:$0xff]   ;;  %p1273_p8 = por %p1272_p7, %p1271_p6 }
  0x18   :  { %v1233_v26 = vld [vmem:[%s1659_s0 + $0xd8] sm:$0xff]   ;;  %v1234_v27 = vld [vmem:[%s1659_s0 + $0xe0] sm:$0xff]   ;;  %v1219_v28 = vld [vmem:[%s1659_s0 + $0x68] sm:$0xff]  }
  0x19   :  { %1105 = vmatpush3.bf16.msra.mxu0 %v1205_v4  ;;  %1195 = vmatpush3.bf16.msra.mxu1 %v1205_v4  ;;  %v1220_v29 = vld [vmem:[%s1659_s0 + $0x70] sm:$0xff]   ;;  %v1235_v30 = vld [vmem:[%s1659_s0 + $0xe8] sm:$0xff]   ;;  %v1221_v32 = vld [vmem:[%s1659_s0 + $0x78] sm:$0xff]   ;;  %p1274_p9 = pnand %p1273_p8, %p1267_p5 }
  0x1a   :  { %v1236_v31 = vld [vmem:[%s1659_s0 + $0xf0] sm:$0xff]   ;;  %v1222_v33 = vld [vmem:[%s1659_s0 + $0x80] sm:$0xff]   ;;  %v1237_v34 = vld [vmem:[%s1659_s0 + $0xf8] sm:$0xff]   ;;  %1170 = vmatprep.subr.bf16.mxu1 %v1313_v37 }
  0x1b   :  { %v1223_v35 = vld [vmem:[%s1659_s0 + $0x88] sm:$0xff]   ;;  %v1238_v36 = vld [vmem:[%s1662_s3 + $0x38] sm:$0xff]   ;;  %v1239_v38 = vld [vmem:[%s1662_s3 + $0x30] sm:$0xff]  }
  0x1c   :  { %1107 = vmatmul.mubr.msk.bf16.vlgmr.msra.gmra.mxu0 %vm294_vm1, %v1207_v5  ;;  %1143 = vmatmul.mubr.msk.bf16.vlgmr.msra.gmra.mxu1 %vm294_vm1, %v1225_v10  ;;  %v1240_v40 = vld [vmem:[%s1662_s3 + $0x28] sm:$0xff]   ;;  %v1517_v42 = vld [vmem:[%s1661_s2] ss:$0 sm:$0xff]  ;;  %v1242_v60 = vld [vmem:[%s1662_s3 + $0x18] sm:$0xff]  }
  0x1d   :  { %1110 = vmatprep.mubr.msk.bf16.mxu0 %vm294_vm1, %v1208_v6  ;;  %1146 = vmatprep.mubr.msk.bf16.mxu1 %vm294_vm1, %v1226_v11  ;;  %v1241_v52 = vld [vmem:[%s1662_s3 + $0x20] sm:$0xff]  }
  0x1e   :  { %1171 = vmatpush3.bf16.msra.mxu1 %v1238_v36 }
  0x1f   :  { %1172 = vmatprep.subr.bf16.mxu1 %v1313_v37 }
  0x22   :  { %1173 = vmatpush3.bf16.msra.mxu1 %v1239_v38 }
  0x23   :  { %1174 = vmatprep.subr.bf16.mxu1 %v1313_v37 }
  0x24   :  { %1111 = vmatmul.mubr.msk.bf16.gmra.mxu0 %vm294_vm1, %v1209_v7  ;;  %1147 = vmatmul.mubr.msk.bf16.gmra.mxu1 %vm294_vm1, %v1227_v14  ;;  %v1243_v7 = vld [vmem:[%s1662_s3 + $0x10] sm:$0xff]  }
  0x25   :  { %1114 = vmatprep.mubr.msk.bf16.mxu0 %vm294_vm1, %v1210_v8  ;;  %1150 = vmatprep.mubr.msk.bf16.mxu1 %vm294_vm1, %v1228_v15 }
  0x26   :  { %1175 = vmatpush3.bf16.msra.mxu1 %v1240_v40 }
  0x27   :  { %1176 = vmatprep.subr.bf16.mxu1 %v1313_v37 }
  0x2a   :  { %1177 = vmatpush3.bf16.msra.mxu1 %v1241_v52 }
  0x2b   :  { %1178 = vmatprep.subr.bf16.mxu1 %v1313_v37 }
  0x2c   :  { %1115 = vmatmul.mubr.msk.bf16.gmra.mxu0 %vm294_vm1, %v1211_v12  ;;  %1151 = vmatmul.mubr.msk.bf16.gmra.mxu1 %vm294_vm1, %v1229_v18 }
  0x2d   :  { %1118 = vmatprep.mubr.msk.bf16.mxu0 %vm294_vm1, %v1212_v13  ;;  %1154 = vmatprep.mubr.msk.bf16.mxu1 %vm294_vm1, %v1230_v19 }
  0x2e   :  { %1179 = vmatpush3.bf16.msra.mxu1 %v1242_v60 }
  0x2f   :  { %1180 = vmatprep.subr.bf16.mxu1 %v1313_v37 }
  0x32   :  { %1181 = vmatpush3.bf16.msra.mxu1 %v1243_v7 }
  0x33   :  { %1182 = vmatprep.subr.bf16.mxu1 %v1313_v37 }
  0x34   :  { %1119 = vmatmul.mubr.msk.bf16.gmra.mxu0 %vm294_vm1, %v1213_v16  ;;  %1155 = vmatmul.mubr.msk.bf16.gmra.mxu1 %vm294_vm1, %v1231_v22  ;;  %v1244_v16 = vld [vmem:[%s1662_s3 + $0x8] sm:$0xff]  }
  0x35   :  { %1122 = vmatprep.mubr.msk.bf16.mxu0 %vm294_vm1, %v1214_v17  ;;  %1158 = vmatprep.mubr.msk.bf16.mxu1 %vm294_vm1, %v1232_v23 }
  0x36   :  { %1183 = vmatpush3.bf16.msra.mxu1 %v1244_v16 }
  0x37   :  { %1184 = vmatprep.subr.bf16.mxu1 %v1313_v37 }
  0x3c   :  { %1123 = vmatmul.mubr.msk.bf16.gmra.mxu0 %vm294_vm1, %v1215_v20  ;;  %1159 = vmatmul.mubr.msk.bf16.gmra.mxu1 %vm294_vm1, %v1233_v26 }
  0x3d   :  { %1126 = vmatprep.mubr.msk.bf16.mxu0 %vm294_vm1, %v1216_v21  ;;  %1162 = vmatprep.mubr.msk.bf16.mxu1 %vm294_vm1, %v1234_v27  ;;  %v1245_v27 = vld [vmem:[%s1662_s3] sm:$0xff]  }
  0x3e   :  { %1185 = vmatpush3.bf16.msra.mxu1 %v1245_v27 }
  0x44   :  { %1127 = vmatmul.mubr.msk.bf16.gmra.mxu0 %vm294_vm1, %v1217_v24  ;;  %1163 = vmatmul.mubr.msk.bf16.gmra.mxu1 %vm294_vm1, %v1235_v30 }
  0x45   :  { %1130 = vmatprep.mubr.msk.bf16.mxu0 %vm294_vm1, %v1218_v25  ;;  %1166 = vmatprep.mubr.msk.bf16.mxu1 %vm294_vm1, %v1236_v31 }
  0x4c   :  { %1131 = vmatmul.mubr.msk.bf16.gmra.mxu0 %vm294_vm1, %v1219_v28  ;;  %1167 = vmatmul.mubr.msk.bf16.gmra.mxu1 %vm294_vm1, %v1237_v34 }
  0x4d   :  { %1134 = vmatprep.mubr.msk.bf16.mxu0 %vm294_vm1, %v1220_v29  ;;  %1186 = vmatprep.mubr.msk.bf16.mxu1 %vm1314_vm2, %v1313_v37 }
  0x54   :  { %1135 = vmatmul.mubr.msk.bf16.gmra.mxu0 %vm294_vm1, %v1221_v32 }
  0x55   :  { %1138 = vmatprep.mubr.msk.bf16.mxu0 %vm294_vm1, %v1222_v33 }
  0x5c   :  { %1139 = vmatmul.mubr.msk.bf16.gmra.mxu0 %vm294_vm1, %v1223_v35 }
  0xdc   :  { %v1108_v39 = vpop.f32.mrf.mxu0  ;;  %v1532_v62 = vpop.f32.mrf.mxu1 }
  0xdd   :  { %v438_v46 = vadd.f32 %v1108_v39, %v1517_v42 }
  0xde   :  { %v429_v41 = vpop.f32.mrf.mxu0  ;;  %v1541_v9 = vpop.f32.mrf.mxu1 }
  0xdf   :  { %v430_v44 = vadd.f32 %v1517_v42, %v429_v41  ;;  %v686_v54 = vmax.f32 %v438_v46, 0.0 }
  0xe0   :  { %v1109_v43 = vpop.f32.mrf.mxu0  ;;  %v1548_v18 = vpop.f32.mrf.mxu1 }
  0xe1   :  { %v684_v49 = vmax.f32 %v430_v44, 0.0  ;;  %v441_v50 = vadd.f32 %v1109_v43, %v1517_v42 }
  0xe2   :  { %v432_v45 = vpop.f32.mrf.mxu0  ;;  %v1557_v29 = vpop.f32.mrf.mxu1 }
  0xe3   :  { %v433_v47 = vadd.f32 %v1517_v42, %v432_v45  ;;  %v687_v58 = vmax.f32 %v441_v50, 0.0 }
  0xe4   :  { %v1112_v48 = vpop.f32.mrf.mxu0  ;;  %v1561_v38 = vpop.f32.mrf.mxu1 }
  0xe5   :  { %v685_v51 = vmax.f32 %v433_v47, 0.0  ;;  %v454_v63 = vadd.f32 %v1112_v48, %v1517_v42 }
  0xe6   :  { %v445_v53 = vpop.f32.mrf.mxu0 }
  0xe7   :  { %v748_v55 = vadd.f32 %v685_v51, %v684_v49  ;;  %v446_v56 = vadd.f32 %v1517_v42, %v445_v53  ;;  %v690_v10 = vmax.f32 %v454_v63, 0.0  ;;  %v1566_v49 = vpop.f32.mrf.mxu1 }
  0xe8   :  { %v1113_v57 = vpop.f32.mrf.mxu0 }
  0xe9   :  { %v749_v59 = vadd.f32 %v748_v55, %v686_v54  ;;  %v688_v0 = vmax.f32 %v446_v56, 0.0  ;;  %v457_v5 = vadd.f32 %v1113_v57, %v1517_v42  ;;  %v1569_v56 = vpop.f32.mrf.mxu1 }
  0xea   :  { %v448_v61 = vpop.f32.mrf.mxu0 }
  0xeb   :  { %v750_v1 = vadd.f32 %v749_v59, %v687_v58  ;;  %v449_v2 = vadd.f32 %v1517_v42, %v448_v61  ;;  %v691_v14 = vmax.f32 %v457_v5, 0.0 }
  0xec   :  { %v1116_v3 = vpop.f32.mrf.mxu0 }
  0xed   :  { %v751_v4 = vadd.f32 %v750_v1, %v688_v0  ;;  %v689_v6 = vmax.f32 %v449_v2, 0.0  ;;  %v470_v19 = vadd.f32 %v1116_v3, %v1517_v42  ;;  %v1574_v3 = vpop.f32.mrf.mxu1 }
  0xee   :  { %v461_v8 = vpop.f32.mrf.mxu0 }
  0xef   :  { %v752_v11 = vadd.f32 %v751_v4, %v689_v6  ;;  %v462_v12 = vadd.f32 %v1517_v42, %v461_v8  ;;  %v694_v30 = vmax.f32 %v470_v19, 0.0 }
  0xf0   :  { %v1117_v13 = vpop.f32.mrf.mxu0 }
  0xf1   :  { %v753_v15 = vadd.f32 %v752_v11, %v690_v10  ;;  %v692_v20 = vmax.f32 %v462_v12, 0.0  ;;  %v473_v25 = vadd.f32 %v1117_v13, %v1517_v42  ;;  %v1577_v12 = vpop.f32.mrf.mxu1 }
  0xf2   :  { %v464_v17 = vpop.f32.mrf.mxu0 }
  0xf3   :  { %v754_v21 = vadd.f32 %v753_v15, %v691_v14  ;;  %v465_v22 = vadd.f32 %v1517_v42, %v464_v17  ;;  %v695_v34 = vmax.f32 %v473_v25, 0.0 }
  0xf4   :  { %v1120_v23 = vpop.f32.mrf.mxu0 }
  0xf5   :  { %v755_v24 = vadd.f32 %v754_v21, %v692_v20  ;;  %v693_v26 = vmax.f32 %v465_v22, 0.0  ;;  %v486_v39 = vadd.f32 %v1120_v23, %v1517_v42  ;;  %v1582_v23 = vpop.f32.mrf.mxu1 }
  0xf6   :  { %v477_v28 = vpop.f32.mrf.mxu0 }
  0xf7   :  { %v756_v31 = vadd.f32 %v755_v24, %v693_v26  ;;  %v478_v32 = vadd.f32 %v1517_v42, %v477_v28  ;;  %v698_v37 = vmax.f32 %v486_v39, 0.0 }
  0xf8   :  { %v1121_v33 = vpop.f32.mrf.mxu0 }
  0xf9   :  { %v757_v35 = vadd.f32 %v756_v31, %v694_v30  ;;  %v696_v40 = vmax.f32 %v478_v32, 0.0  ;;  %v489_v46 = vadd.f32 %v1121_v33, %v1517_v42  ;;  %v1585_v32 = vpop.f32.mrf.mxu1 }
  0xfa   :  { %v480_v36 = vpop.f32.mrf.mxu0 }
  0xfb   :  { %v758_v41 = vadd.f32 %v757_v35, %v695_v34  ;;  %v481_v43 = vadd.f32 %v1517_v42, %v480_v36  ;;  %v699_v53 = vmax.f32 %v489_v46, 0.0 }
  0xfc   :  { %v1124_v44 = vpop.f32.mrf.mxu0 }
  0xfd   :  { %v759_v45 = vadd.f32 %v758_v41, %v696_v40  ;;  %v697_v47 = vmax.f32 %v481_v43, 0.0  ;;  %v502_v57 = vadd.f32 %v1124_v44, %v1517_v42 }
  0xfe   :  { %v493_v48 = vpop.f32.mrf.mxu0 }
  0xff   :  { %v760_v50 = vadd.f32 %v759_v45, %v697_v47  ;;  %v494_v51 = vadd.f32 %v1517_v42, %v493_v48  ;;  %v702_v4 = vmax.f32 %v502_v57, 0.0  ;;  %v1590_v45 = vpop.f32.mrf.mxu1 }
 0x100   :  { %v1125_v52 = vpop.f32.mrf.mxu0 }
 0x101   :  { %v761_v54 = vadd.f32 %v760_v50, %v698_v37  ;;  %v700_v58 = vmax.f32 %v494_v51, 0.0  ;;  %v505_v0 = vadd.f32 %v1125_v52, %v1517_v42 }
 0x102   :  { %v496_v55 = vpop.f32.mrf.mxu0 }
 0x103   :  { %v762_v59 = vadd.f32 %v761_v54, %v699_v53  ;;  %v497_v60 = vadd.f32 %v1517_v42, %v496_v55  ;;  %v703_v8 = vmax.f32 %v505_v0, 0.0  ;;  %v1593_v53 = vpop.f32.mrf.mxu1 }
 0x104   :  { %v1128_v61 = vpop.f32.mrf.mxu0 }
 0x105   :  { %v763_v63 = vadd.f32 %v762_v59, %v700_v58  ;;  %v701_v1 = vmax.f32 %v497_v60, 0.0  ;;  %v518_v13 = vadd.f32 %v1128_v61, %v1517_v42 }
 0x106   :  { %v509_v2 = vpop.f32.mrf.mxu0 }
 0x107   :  { %v764_v5 = vadd.f32 %v763_v63, %v701_v1  ;;  %v510_v6 = vadd.f32 %v1517_v42, %v509_v2  ;;  %v706_v24 = vmax.f32 %v518_v13, 0.0  ;;  %v621_v1 = vpop.f32.mrf.mxu1 }
 0x108   :  { %v1129_v7 = vpop.f32.mrf.mxu0 }
 0x109   :  { %v765_v10 = vadd.f32 %v764_v5, %v702_v4  ;;  %v704_v14 = vmax.f32 %v510_v6, 0.0  ;;  %v521_v20 = vadd.f32 %v1129_v7, %v1517_v42 }
 0x10a   :  { %v512_v11 = vpop.f32.mrf.mxu0 }
 0x10b   :  { %v766_v15 = vadd.f32 %v765_v10, %v703_v8  ;;  %v513_v16 = vadd.f32 %v1517_v42, %v512_v11  ;;  %v707_v28 = vmax.f32 %v521_v20, 0.0  ;;  %v1157_v11 = vpop.f32.mrf.mxu1 }
 0x10c   :  { %v1132_v17 = vpop.f32.mrf.mxu0 }
 0x10d   :  { %v767_v19 = vadd.f32 %v766_v15, %v704_v14  ;;  %v705_v21 = vmax.f32 %v513_v16, 0.0  ;;  %v534_v33 = vadd.f32 %v1132_v17, %v1517_v42  ;;  %v624_v20 = vpop.f32.mrf.mxu1 }
 0x10e   :  { %v525_v22 = vpop.f32.mrf.mxu0 }
 0x10f   :  { %v768_v25 = vadd.f32 %v767_v19, %v705_v21  ;;  %v526_v26 = vadd.f32 %v1517_v42, %v525_v22  ;;  %v710_v46 = vmax.f32 %v534_v33, 0.0  ;;  %v574_v22 = vadd.f32 %v1517_v42, %v1541_v9 }
 0x110   :  { %v1133_v27 = vpop.f32.mrf.mxu0 }
 0x111   :  { %v769_v30 = vadd.f32 %v768_v25, %v706_v24  ;;  %v708_v34 = vmax.f32 %v526_v26, 0.0  ;;  %v537_v41 = vadd.f32 %v1133_v27, %v1517_v42  ;;  %v577_v27 = vadd.f32 %v1517_v42, %v1557_v29 }
 0x112   :  { %v528_v31 = vpop.f32.mrf.mxu0  ;;  %v593_v29 = vadd.f32 %v1517_v42, %v1574_v3  ;;  %v609_v3 = vadd.f32 %v1517_v42, %v1590_v45  ;;  %v625_v45 = vadd.f32 %v1517_v42, %v624_v20 }
 0x113   :  { %v770_v35 = vadd.f32 %v769_v30, %v707_v28  ;;  %v529_v36 = vadd.f32 %v1517_v42, %v528_v31  ;;  %v711_v50 = vmax.f32 %v537_v41, 0.0  ;;  %v1160_v28 = vpop.f32.mrf.mxu1  ;;  %v582_v30 = vadd.f32 %v1532_v62, %v1517_v42 }
 0x114   :  { %v1136_v39 = vpop.f32.mrf.mxu0  ;;  %v720_v31 = vmax.f32 %v574_v22, 0.0  ;;  %v590_v41 = vadd.f32 %v1517_v42, %v1566_v49  ;;  %v598_v62 = vadd.f32 %v1561_v38, %v1517_v42  ;;  %v606_v49 = vadd.f32 %v1517_v42, %v1582_v23 }
 0x115   :  { %v771_v40 = vadd.f32 %v770_v35, %v708_v34  ;;  %v709_v43 = vmax.f32 %v529_v36, 0.0  ;;  %v550_v54 = vadd.f32 %v1136_v39, %v1517_v42  ;;  %v585_v34 = vadd.f32 %v1548_v18, %v1517_v42  ;;  %v637_v39 = vpop.f32.mrf.mxu1 }
 0x116   :  { %v541_v44 = vpop.f32.mrf.mxu0  ;;  %v721_v35 = vmax.f32 %v577_v27, 0.0  ;;  %v614_v38 = vadd.f32 %v1577_v12, %v1517_v42  ;;  %v622_v23 = vadd.f32 %v1517_v42, %v621_v1  ;;  %v630_v12 = vadd.f32 %v1593_v53, %v1517_v42 }
 0x117   :  { %v772_v47 = vadd.f32 %v771_v40, %v709_v43  ;;  %v542_v48 = vadd.f32 %v1517_v42, %v541_v44  ;;  %v714_v2 = vmax.f32 %v550_v54, 0.0  ;;  %v722_v40 = vmax.f32 %v582_v30, 0.0 }
 0x118   :  { %v1137_v37 = vpop.f32.mrf.mxu0  ;;  %v723_v43 = vmax.f32 %v585_v34, 0.0 }
 0x119   :  { %v773_v51 = vadd.f32 %v772_v47, %v710_v46  ;;  %v712_v55 = vmax.f32 %v542_v48, 0.0  ;;  %v553_v61 = vadd.f32 %v1137_v37, %v1517_v42  ;;  %v1161_v46 = vpop.f32.mrf.mxu1  ;;  %v724_v47 = vmax.f32 %v590_v41, 0.0 }
 0x11a   :  { %v544_v52 = vpop.f32.mrf.mxu0  ;;  %v601_v37 = vadd.f32 %v1569_v56, %v1517_v42  ;;  %v617_v56 = vadd.f32 %v1585_v32, %v1517_v42  ;;  %v733_v32 = vmax.f32 %v625_v45, 0.0  ;;  %v649_v30 = vadd.f32 %v1161_v46, %v1517_v42 }
 0x11b   :  { %v774_v57 = vadd.f32 %v773_v51, %v711_v50  ;;  %v545_v58 = vadd.f32 %v1517_v42, %v544_v52  ;;  %v715_v6 = vmax.f32 %v553_v61, 0.0  ;;  %v725_v50 = vmax.f32 %v593_v29, 0.0  ;;  %v640_v51 = vpop.f32.mrf.mxu1 }
 0x11c   :  { %v1140_v59 = vpop.f32.mrf.mxu0  ;;  %v726_v52 = vmax.f32 %v598_v62, 0.0 }
 0x11d   :  { %v775_v60 = vadd.f32 %v774_v57, %v712_v55  ;;  %v713_v63 = vmax.f32 %v545_v58, 0.0  ;;  %v566_v14 = vadd.f32 %v1140_v59, %v1517_v42  ;;  %v727_v55 = vmax.f32 %v601_v37, 0.0  ;;  %v1164_v58 = vpop.f32.mrf.mxu1 }
 0x11e   :  { %v557_v0 = vpop.f32.mrf.mxu0  ;;  %v728_v59 = vmax.f32 %v606_v49, 0.0  ;;  %v662_v41 = vadd.f32 %v1164_v58, %v1517_v42 }
 0x11f   :  { %v776_v4 = vadd.f32 %v775_v60, %v713_v63  ;;  %v558_v8 = vadd.f32 %v1517_v42, %v557_v0  ;;  %v718_v21 = vmax.f32 %v566_v14, 0.0  ;;  %v729_v63 = vmax.f32 %v609_v3, 0.0  ;;  %v653_v0 = vpop.f32.mrf.mxu1 }
 0x120   :  { %v1141_v5 = vpop.f32.mrf.mxu0 }
 0x121   :  { %v777_v7 = vadd.f32 %v776_v4, %v714_v2  ;;  %v716_v16 = vmax.f32 %v558_v8, 0.0  ;;  %v569_v17 = vadd.f32 %v1141_v5, %v1517_v42  ;;  %v730_v2 = vmax.f32 %v614_v38, 0.0 }
 0x122   :  { %v560_v10 = vpop.f32.mrf.mxu0  ;;  %v731_v5 = vmax.f32 %v617_v56, 0.0  ;;  %v732_v8 = vmax.f32 %v622_v23, 0.0 }
 0x123   :  { %v1599_v13 = vadd.f32 %v777_v7, %v715_v6  ;;  %v561_v15 = vadd.f32 %v1517_v42, %v560_v10  ;;  %v719_v25 = vmax.f32 %v569_v17, 0.0  ;;  %v1165_v7 = vpop.f32.mrf.mxu1  ;;  %v734_v17 = vmax.f32 %v630_v12, 0.0 }
 0x124   :  { %v665_v46 = vadd.f32 %v1165_v7, %v1517_v42 }
 0x125   :  { %v717_v19 = vmax.f32 %v561_v15, 0.0  ;;  %v633_v15 = vadd.f32 %v1157_v11, %v1517_v42 }
 0x127   :  { %v785_v24 = vadd.f32 %v717_v19, %v716_v16  ;;  %v656_v16 = vpop.f32.mrf.mxu1  ;;  %v735_v1 = vmax.f32 %v633_v15, 0.0 }
 0x129   :  { %v786_v26 = vadd.f32 %v785_v24, %v718_v21  ;;  %v638_v21 = vadd.f32 %v1517_v42, %v637_v39  ;;  %v641_v24 = vadd.f32 %v1517_v42, %v640_v51  ;;  %v1168_v20 = vpop.f32.mrf.mxu1  ;;  %v743_v51 = vmax.f32 %v665_v46, 0.0 }
 0x12a   :  { %v678_v49 = vadd.f32 %v1168_v20, %v1517_v42 }
 0x12b   :  { %v787_v33 = vadd.f32 %v786_v26, %v719_v25  ;;  %v646_v25 = vadd.f32 %v1160_v28, %v1517_v42  ;;  %v736_v26 = vmax.f32 %v638_v21, 0.0  ;;  %v669_v11 = vpop.f32.mrf.mxu1  ;;  %v947_v21 = vld [vmem:[%s1665_s6] sm:$0x1] }
 0x12c   :  { %v670_v37 = vadd.f32 %v1517_v42, %v669_v11 }
 0x12d   :  { %v788_v36 = vadd.f32 %v787_v33, %v720_v31  ;;  %v737_v31 = vmax.f32 %v641_v24, 0.0  ;;  %v738_v33 = vmax.f32 %v646_v25, 0.0 }
 0x12f   :  { %v789_v9 = vadd.f32 %v788_v36, %v721_v35  ;;  %v654_v35 = vadd.f32 %v1517_v42, %v653_v0  ;;  %v739_v36 = vmax.f32 %v649_v30, 0.0 }
 0x131   :  { %v790_v44 = vadd.f32 %v789_v9, %v722_v40  ;;  %v657_v40 = vadd.f32 %v1517_v42, %v656_v16  ;;  %v1169_v9 = vpop.f32.mrf.mxu1 }
 0x132   :  { %v681_v38 = vadd.f32 %v1169_v9, %v1517_v42 }
 0x133   :  { %v791_v48 = vadd.f32 %v790_v44, %v723_v43  ;;  %v740_v43 = vmax.f32 %v654_v35, 0.0  ;;  %v779_v44 = vrot.slane %v1599_v13, 4  ;;  %v741_v62 = vmax.f32 %v657_v40, 0.0 }
 0x135   :  { %v792_v18 = vadd.f32 %v791_v48, %v724_v47  ;;  %v672_v47 = vpop.f32.mrf.mxu1  ;;  %v742_v48 = vmax.f32 %v662_v41, 0.0 }
 0x137   :  { %v793_v54 = vadd.f32 %v792_v18, %v725_v50  ;;  %v780_v50 = vadd.f32 %v779_v44, %v1599_v13 }
 0x139   :  { %v794_v57 = vadd.f32 %v793_v54, %v726_v52  ;;  %v673_v54 = vadd.f32 %v1517_v42, %v672_v47  ;;  %v781_v3 = vrot.slane %v780_v50, 2 }
 0x13b   :  { %v795_v60 = vadd.f32 %v794_v57, %v727_v55  ;;  %v744_v55 = vmax.f32 %v670_v37, 0.0  ;;  %v782_v56 = vadd.f32 %v781_v3, %v780_v50 }
 0x13d   :  { %v796_v61 = vadd.f32 %v795_v60, %v728_v59  ;;  %v745_v59 = vmax.f32 %v673_v54, 0.0  ;;  %v746_v60 = vmax.f32 %v678_v49, 0.0  ;;  %v783_v13 = vrot.slane %v782_v56, 1 }
 0x13f   :  { %v797_v4 = vadd.f32 %v796_v61, %v729_v63  ;;  %v747_v63 = vmax.f32 %v681_v38, 0.0 }
 0x141   :  { %v798_v6 = vadd.f32 %v797_v4, %v730_v2 }
 0x143   :  { %v799_v10 = vadd.f32 %v798_v6, %v731_v5  ;;  %v784_v5 = vadd.f32 %v783_v13, %v782_v56 }
 0x145   :  { %v800_v14 = vadd.f32 %v799_v10, %v732_v8  ;;  %v822_v7 = vmul.f32 0.00390625, %v784_v5 }
 0x147   :  { %v801_v19 = vadd.f32 %v800_v14, %v733_v32  ;;  %v824_v10 = vpack.c.bf16 %v822_v7, %v822_v7 }
 0x149   :  { %v802_v22 = vadd.f32 %v801_v19, %v734_v17  ;;  %v851_v42 = vunpack.c.l.b16 %v824_v10  ;;  %v946_v19 = vld [vmem:[#allocation2] sm:$0x1] }
 0x14b   :  { %v803_v53 = vadd.f32 %v802_v22, %v735_v1  ;;  %v948_v1 = vadd.s32 %v947_v21, %v946_v19 }
 0x14d   :  { %v804_v27 = vadd.f32 %v803_v53, %v736_v26  ;;  %949 = vst [vmem:[#allocation6] sm:$0x1] %v948_v1 }
 0x14f   :  { %v805_v34 = vadd.f32 %v804_v27, %v737_v31 }
 0x151   :  { %v806_v39 = vadd.f32 %v805_v34, %v738_v33 }
 0x153   :  { %v807_v28 = vadd.f32 %v806_v39, %v739_v36 }
 0x155   :  { %v808_v29 = vadd.f32 %v807_v28, %v740_v43 }
 0x157   :  { %v809_v18 = vadd.f32 %v808_v29, %v741_v62 }
 0x159   :  { %v810_v52 = vadd.f32 %v809_v18, %v742_v48 }
 0x15b   :  { %v811_v57 = vadd.f32 %v810_v52, %v743_v51 }
 0x15d   :  { %v812_v58 = vadd.f32 %v811_v57, %v744_v55 }
 0x15f   :  { %v813_v61 = vadd.f32 %v812_v58, %v745_v59 }
 0x161   :  { %v814_v0 = vadd.f32 %v813_v61, %v746_v60 }
 0x163   :  { %v815_v2 = vadd.f32 %v814_v0, %v747_v63 }
 0x165   :  { %v816_v4 = vrot.slane %v815_v2, 4 }
 0x167   :  { %v817_v23 = vadd.f32 %v816_v4, %v815_v2 }
 0x169   :  { %v818_v6 = vrot.slane %v817_v23, 2 }
 0x16b   :  { %v819_v45 = vadd.f32 %v818_v6, %v817_v23 }
 0x16d   :  { %v820_v12 = vrot.slane %v819_v45, 1 }
 0x16f   :  { %v821_v8 = vadd.f32 %v820_v12, %v819_v45 }
 0x171   :  { %v823_v14 = vmul.f32 0.00390625, %v821_v8 }
 0x173   :  { %v825_v15 = vpack.c.bf16 %v823_v14, %v823_v14 }
 0x175   :  { %v852_v32 = vunpack.c.l.b16 %v825_v15 }
 0x177   :  { %v854_v16 = vsel %vm853_vm3, %v852_v32, %v851_v42 }
 0x178   :  { %v855_v17 = vpack.c.b16 %v854_v16, %v854_v16 }
 0x17a   :  { %1187 = vmatmul.mubr.bf16.vlgmr.msra.gmra.mxu1 %v855_v17 }
 0x17b   :  { %1277 = shalt.err (!%p1274_p9)
}
 0x17c   :  { %969 = dma.vmem_to_hbm [thread:$0]  %s967_s25, 16, %s1667_s8, [#allocation7]   ;;  %v1047_v22 = vld [vmem:[%s1663_s4] ss:$0 sm:$0xff] }
 0x17d   :  { %s1316_s6 = smov [#allocation5]  }
 0x17e   :  { %s956_s10 = sshll.u32 %s1316_s6, 4  ;;  %s957_s10 = int_to_ptr.vmem [resolvable:$true] %s956_s10 }
 0x17f   :  { %s1286_s11 = scalar_lea.vmem %s957_s10, 32  ;;  %p1291_p11 = scmp.lt.s32.totalorder %s957_s10, %s957_s10 }
 0x180   :  { %p1287_p10 = scmp.ne.s32.totalorder %s957_s10, %s1286_s11  ;;  %p1292_p12 = scmp.lt.s32.totalorder %s1286_s11, %s1286_s11 }
 0x182   :  { %p1293_p13 = por %p1292_p12, %p1291_p11 }
 0x184   :  { %p1294_p0 = pnand %p1293_p13, %p1287_p10 }
 0x23a   :  { %v939_v24 = vpop.f32.mrf.mxu1 }
 0x23b   :  { %v940_v20 = vadd.f32 %v1047_v22, %v939_v24 }
 0x23c   :  { %v1188_v25 = vpop.f32.mrf.mxu1 }
 0x23d   :  { %945 = vst [vmem:[#allocation5] sm:$0x3] %v940_v20 }
 0x23e   :  { %v942_v26 = vpop.f32.mrf.mxu1 }
 0x23f   :  { %1297 = shalt.err (!%p1294_p0)
}
 0x240   :  { %959 = dma.vmem_to_hbm [thread:$0]  %s957_s10, 32, %s1666_s7, [#allocation4]   ;;  %v1189_v53 = vpop.f32.mrf.mxu1 }
 0x241   :  { %1308 = dma.done.wait [#allocation4], 32  }
 0x242   :  { %1309 = vsyncadd [#allocation4], 4294967264 }
 0x243   :  { %1310 = dma.done.wait [#allocation7], 16  }
 0x244   :  { %1311 = vsyncadd [#allocation7], 4294967280 }
 0x245   :  { %976 = vsyncpa [#allocation3], 1 }
 0x246   :  { %977 = vsyncpa [#allocation4], 1 }
 0x247   :  { %978 = vsyncpa [#allocation7], 1 }

</bundles_post_ra>
